<compile_context>
chip_gen: v6e
topology: v6e:2x2x1
jax: 0.10.0
libtpu: 0.0.40
codegen_flags: <defaults>
</compile_context>

<pallas_src>
import functools

import jax
import jax.numpy as jnp
from jax import lax
from jax.experimental import pallas as pl
from jax.experimental.pallas import tpu as pltpu

LANES = 128
CHUNK = 64  # rows per inner chunk; multiple of the sublane packing (8/16/32)


def _round_up(x, m):
    return ((x + m - 1) // m) * m


def _mse_kernel(p_ref, g_ref, o_ref, acc_ref, *, chunk, tile_rows, valid_rows,
                blocks_total, full_blocks, tail_partial, gate_blocks, unroll):
    c = pl.program_id(0)          # split (TensorCore-parallel) axis
    i = pl.program_id(1)          # reduction axis within the split
    inner_steps = pl.num_programs(1)
    blk = c * inner_steps + i     # logical block index (may exceed blocks_total-1)
    nchunks = tile_rows // chunk

    @pl.when(i == 0)
    def _():
        acc_ref[...] = jnp.zeros_like(acc_ref)

    def accumulate(masked):
        def body(j, acc):
            off = pl.multiple_of(j * chunk, chunk)
            pc = p_ref[pl.ds(off, chunk), :].astype(jnp.float32)
            gc = g_ref[pl.ds(off, chunk), :].astype(jnp.float32)
            d = pc - gc
            sq = d * d
            if masked:
                row = (blk * tile_rows + off
                       + lax.broadcasted_iota(jnp.int32, sq.shape, 0))
                sq = jnp.where(row < valid_rows, sq, jnp.float32(0.0))
            return acc + sq

        part = lax.fori_loop(0, nchunks, body,
                             jnp.zeros((chunk, LANES), jnp.float32),
                             unroll=unroll)
        acc_ref[...] += part

    if not gate_blocks:
        # Every block is fully in-bounds: pure unmasked streaming accumulate.
        accumulate(masked=False)
    else:
        @pl.when(blk < full_blocks)
        def _():
            accumulate(masked=False)

        if tail_partial:
            # Only the single (possibly partial) last block pays for the mask.
            @pl.when(blk == blocks_total - 1)
            def _():
                accumulate(masked=True)
        # blocks with blk >= blocks_total (clamped duplicate DMA) are skipped.

    @pl.when(i == inner_steps - 1)
    def _():
        o_ref[0] = acc_ref[...]


def basic_loss(pred, ground_truth, *, target_block_bytes=4 * 1024 * 1024,
               max_tile_rows=None):
    """MSE loss == torch.nn.MSELoss()(pred, ground_truth). Returns f32 scalar."""
    assert pred.shape == ground_truth.shape, "MSELoss requires matching shapes"
    n = pred.size
    assert n > 0

    p = jnp.ravel(pred)
    g = jnp.ravel(ground_truth)

    # Minimal alignment pad to a (CHUNK, LANES) tile (64 rows covers the packed
    # sublane tile for f32/bf16/int8). Zero padding contributes 0 to the sum.
    aligned = _round_up(n, CHUNK * LANES)
    if aligned != n:
        p = jnp.pad(p, (0, aligned - n))
        g = jnp.pad(g, (0, aligned - n))
    rows = aligned // LANES                       # multiple of CHUNK
    p = p.reshape(rows, LANES)
    g = g.reshape(rows, LANES)

    # Size the block in bytes so per-step DMA stays ~constant across dtypes.
    row_bytes_p = LANES * jnp.dtype(p.dtype).itemsize
    row_bytes_g = LANES * jnp.dtype(g.dtype).itemsize
    row_bytes = max(row_bytes_p, row_bytes_g)
    tile_rows = max(CHUNK, (target_block_bytes // row_bytes) // CHUNK * CHUNK)
    if max_tile_rows is not None:
        tile_rows = min(tile_rows, max(CHUNK, (max_tile_rows // CHUNK) * CHUNK))
    tile_rows = min(tile_rows, rows)

    blocks_total = pl.cdiv(rows, tile_rows)
    # 2-way split across the parallel axis (v7x megacore); harmless on 1-TC chips.
    num_splits = 2 if blocks_total >= 2 else 1
    inner_steps = pl.cdiv(blocks_total, num_splits)
    tail_partial = (rows % tile_rows) != 0
    full_blocks = blocks_total - 1 if tail_partial else blocks_total
    gate_blocks = tail_partial or (num_splits * inner_steps > blocks_total)

    nchunks = tile_rows // CHUNK
    unroll = min(8, nchunks)

    def in_index_map(c, i):
        # Clamp so the pipelined DMA never reads a block starting past the array
        # (the kernel skips the accumulate for such blocks).
        return (jnp.minimum(c * inner_steps + i, blocks_total - 1), 0)

    kernel = functools.partial(
        _mse_kernel,
        chunk=CHUNK,
        tile_rows=tile_rows,
        valid_rows=rows,
        blocks_total=blocks_total,
        full_blocks=full_blocks,
        tail_partial=tail_partial,
        gate_blocks=gate_blocks,
        unroll=unroll,
    )

    # 2 pipeline buffers x (pred block + gt block) + headroom for scratch/out.
    block_bytes = tile_rows * (row_bytes_p + row_bytes_g)
    vmem_limit = min(int(2 * block_bytes + (8 << 20)), 100 << 20)

    partials = pl.pallas_call(
        kernel,
        out_shape=jax.ShapeDtypeStruct((num_splits, CHUNK, LANES), jnp.float32),
        grid_spec=pltpu.PrefetchScalarGridSpec(
            num_scalar_prefetch=0,
            grid=(num_splits, inner_steps),
            in_specs=[
                pl.BlockSpec((tile_rows, LANES), in_index_map),
                pl.BlockSpec((tile_rows, LANES), in_index_map),
            ],
            # Per-split lane-dense partial-sum block, written once per split.
            out_specs=pl.BlockSpec((1, CHUNK, LANES), lambda c, i: (c, 0, 0)),
            scratch_shapes=[pltpu.VMEM((CHUNK, LANES), jnp.float32)],
        ),
        compiler_params=pltpu.CompilerParams(
            dimension_semantics=("parallel", "arbitrary"),
            vmem_limit_bytes=vmem_limit,
        ),
    )(p, g)

    # Tiny final reduce of the per-split partial sums in the wrapper.
    return jnp.sum(partials) / jnp.float32(n)


if __name__ == "__main__":
    key = jax.random.PRNGKey(0)
    k1, k2, k3, k4 = jax.random.split(key, 4)

    # Shapes consistent with a typical NCHW prediction / ground-truth pair.
    pred = jax.random.normal(k1, (2, 4, 16, 16), dtype=jnp.float32)
    gt = jax.random.normal(k2, (2, 4, 16, 16), dtype=jnp.float32)
    loss = basic_loss(pred, gt)
    jax.block_until_ready(loss)
    ref = jnp.mean((pred - gt) ** 2)
    assert jnp.allclose(loss, ref, rtol=1e-5, atol=1e-6), (loss, ref)

    # Partial-tail (masked last block) + 2-way split path.
    pred2 = jax.random.normal(k3, (2, 4, 50, 50), dtype=jnp.float32)
    gt2 = jax.random.normal(k4, (2, 4, 50, 50), dtype=jnp.float32)
    ref2 = jnp.mean((pred2 - gt2) ** 2)
    loss2 = basic_loss(pred2, gt2, max_tile_rows=128)
    jax.block_until_ready(loss2)
    assert jnp.allclose(loss2, ref2, rtol=1e-5, atol=1e-6), (loss2, ref2)

    # Odd block count with the 2-way split (one fully out-of-range block skipped).
    loss3 = basic_loss(pred2, gt2, max_tile_rows=64)
    jax.block_until_ready(loss3)
    assert jnp.allclose(loss3, ref2, rtol=1e-5, atol=1e-6), (loss3, ref2)

    # bf16 inputs exercise the 16-row sublane-packing path (kernel upcasts to f32).
    pred4 = pred2.astype(jnp.bfloat16)
    gt4 = gt2.astype(jnp.bfloat16)
    loss4 = basic_loss(pred4, gt4, max_tile_rows=128)
    jax.block_until_ready(loss4)
    ref4 = jnp.mean((pred4.astype(jnp.float32) - gt4.astype(jnp.float32)) ** 2)
    assert jnp.allclose(loss4, ref4, rtol=1e-5, atol=1e-6), (loss4, ref4)

    print("KERNEL_OK")
</pallas_src>

<mosaic_0001>
module attributes {stable_mosaic.version = 11 : i64} {
  func.func @_mse_kernel(%arg0: i32, %arg1: i32, %arg2: memref<64x128xf32, #tpu.memory_space<vmem>>, %arg3: memref<64x128xf32, #tpu.memory_space<vmem>>, %arg4: memref<1x64x128xf32, #tpu.memory_space<vmem>>, %arg5: memref<64x128xf32, #tpu.memory_space<vmem>>) attributes {dimension_semantics = [#tpu.dimension_semantics<parallel>, #tpu.dimension_semantics<arbitrary>], iteration_bounds = array<i64: 1, 1>, scalar_prefetch = 0 : i64, scratch_operands = 1 : i64, tpu.core_type = #tpu.core_type<tc>, window_params = [{transform_indices = @transform_0, window_bounds = array<i64: 64, 128>}, {transform_indices = @transform_1, window_bounds = array<i64: 64, 128>}, {transform_indices = @transform_2, window_bounds = array<i64: 1, 64, 128>}]} {
    %c0_i32 = arith.constant 0 : i32
    %0 = arith.cmpi eq, %arg1, %c0_i32 : i32
    %1 = arith.extui %0 : i1 to i32
    %c0_i32_0 = arith.constant 0 : i32
    %2 = arith.cmpi ne, %1, %c0_i32_0 : i32
    scf.if %2 {
      %cst_9 = arith.constant 0.000000e+00 : f32
      %19 = vector.broadcast %cst_9 : f32 to vector<64x128xf32>
      %c0_10 = arith.constant 0 : index
      %c0_11 = arith.constant 0 : index
      %20 = vector.load %arg5[%c0_10, %c0_11] : memref<64x128xf32, #tpu.memory_space<vmem>>, vector<64x128xf32>
      tpu.vector_store %arg5[%c0_10, %c0_11], %19 {strides = array<i32>} : memref<64x128xf32, #tpu.memory_space<vmem>>, vector<64x128xf32>,
    } else {
    }
    %cst = arith.constant 0.000000e+00 : f32
    %3 = vector.broadcast %cst : f32 to vector<64x128xf32>
    %c0_i32_1 = arith.constant 0 : i32
    %c64_i32 = arith.constant 64 : i32
    %4 = arith.muli %c0_i32_1, %c64_i32 : i32
    %5 = tpu.assume_multiple %4, 64 : i32
    %6 = arith.index_cast %5 : i32 to index
    %c0 = arith.constant 0 : index
    %7 = vector.load %arg2[%6, %c0] : memref<64x128xf32, #tpu.memory_space<vmem>>, vector<64x128xf32>
    %8 = arith.index_cast %5 : i32 to index
    %c0_2 = arith.constant 0 : index
    %9 = vector.load %arg3[%8, %c0_2] : memref<64x128xf32, #tpu.memory_space<vmem>>, vector<64x128xf32>
    %10 = arith.subf %7, %9 : vector<64x128xf32>
    %11 = arith.mulf %10, %10 : vector<64x128xf32>
    %12 = arith.addf %3, %11 : vector<64x128xf32>
    %c1_i32 = arith.constant 1 : i32
    %c0_3 = arith.constant 0 : index
    %c0_4 = arith.constant 0 : index
    %13 = vector.load %arg5[%c0_3, %c0_4] : memref<64x128xf32, #tpu.memory_space<vmem>>, vector<64x128xf32>
    %14 = arith.addf %13, %12 : vector<64x128xf32>
    %c0_5 = arith.constant 0 : index
    %c0_6 = arith.constant 0 : index
    %15 = vector.load %arg5[%c0_5, %c0_6] : memref<64x128xf32, #tpu.memory_space<vmem>>, vector<64x128xf32>
    tpu.vector_store %arg5[%c0_5, %c0_6], %14 {strides = array<i32>} : memref<64x128xf32, #tpu.memory_space<vmem>>, vector<64x128xf32>,
    %c0_i32_7 = arith.constant 0 : i32
    %16 = arith.cmpi eq, %arg1, %c0_i32_7 : i32
    %17 = arith.extui %16 : i1 to i32
    %c0_i32_8 = arith.constant 0 : i32
    %18 = arith.cmpi ne, %17, %c0_i32_8 : i32
    scf.if %18 {
      %c0_9 = arith.constant 0 : index
      %c0_10 = arith.constant 0 : index
      %19 = vector.load %arg5[%c0_9, %c0_10] : memref<64x128xf32, #tpu.memory_space<vmem>>, vector<64x128xf32>
      %c0_11 = arith.constant 0 : index
      %c0_12 = arith.constant 0 : index
      %c0_13 = arith.constant 0 : index
      %20 = vector.load %arg4[%c0_11, %c0_12, %c0_13] : memref<1x64x128xf32, #tpu.memory_space<vmem>>, vector<1x64x128xf32>
      %21 = vector.shape_cast %20 : vector<1x64x128xf32> to vector<64x128xf32>
      %22 = vector.shape_cast %19 : vector<64x128xf32> to vector<1x64x128xf32>
      tpu.vector_store %arg4[%c0_11, %c0_12, %c0_13], %22 {strides = array<i32>} : memref<1x64x128xf32, #tpu.memory_space<vmem>>, vector<1x64x128xf32>,
    } else {
    }
    return
  }
  func.func @transform_0(%arg0: i32, %arg1: i32) -> (i32, i32) {
    %c1_i32 = arith.constant 1 : i32
    %0 = arith.muli %arg0, %c1_i32 : i32
    %1 = arith.addi %0, %arg1 : i32
    %c0_i32 = arith.constant 0 : i32
    %2 = arith.minsi %1, %c0_i32 : i32
    %c0_i32_0 = arith.constant 0 : i32
    %c0_i32_1 = arith.constant 0 : i32
    return %2, %c0_i32_0 : i32, i32
  }
  func.func @transform_1(%arg0: i32, %arg1: i32) -> (i32, i32) {
    %c1_i32 = arith.constant 1 : i32
    %0 = arith.muli %arg0, %c1_i32 : i32
    %1 = arith.addi %0, %arg1 : i32
    %c0_i32 = arith.constant 0 : i32
    %2 = arith.minsi %1, %c0_i32 : i32
    %c0_i32_0 = arith.constant 0 : i32
    %c0_i32_1 = arith.constant 0 : i32
    return %2, %c0_i32_0 : i32, i32
  }
  func.func @transform_2(%arg0: i32, %arg1: i32) -> (i32, i32, i32) {
    %c0_i32 = arith.constant 0 : i32
    %c0_i32_0 = arith.constant 0 : i32
    %c0_i32_1 = arith.constant 0 : i32
    return %arg0, %c0_i32, %c0_i32_0 : i32, i32, i32
  }
}

</mosaic_0001>

<bundles_post_ra>
// kernel: tpu_custom_call.1
= control target key start
LH: loop header
LB: loop body
LE: loop exit
PB: predicated region body
PF: predicated region fallthrough
CT: control target
= control target key end

     0   :  { %7 = vsyncpa [#allocation4], 0  ;;  %s286_s0 = inlined_call_operand.hbm [shape: f32[64,128], index: 0, kind: input, shape index: {}]   ;;  %s287_s1 = inlined_call_operand.hbm [shape: f32[64,128], index: 1, kind: input, shape index: {}]   ;;  %s288_s2 = inlined_call_operand.hbm [shape: f32[1,64,128], index: 2, kind: output, shape index: {}]  }
   0x1   :  { %8 = vsyncpa [#allocation7], 0 }
   0x2   :  { %9 = vsyncpa [#allocation5], 0  ;;  %s248_s9 = smov [#allocation3]  }
   0x3   :  { %s21_s10 = sshll.u32 %s248_s9, 4  ;;  %s22_s10 = int_to_ptr.vmem [resolvable:$true] %s21_s10 }
   0x4   :  { %s190_s11 = scalar_lea.vmem %s22_s10, 1024  ;;  %p195_p1 = scmp.lt.s32.totalorder %s22_s10, %s22_s10 }
   0x5   :  { %p191_p0 = scmp.ne.s32.totalorder %s22_s10, %s190_s11  ;;  %p196_p2 = scmp.lt.s32.totalorder %s190_s11, %s190_s11 }
   0x7   :  { %p197_p3 = por %p196_p2, %p195_p1 }
   0x9   :  { %p198_p4 = pnand %p197_p3, %p191_p0 }
   0xb   :  { %201 = shalt.err (!%p198_p4)
}
   0xc   :  { %s249_s12 = smov 128   ;;  %s250_s13 = smov 8  }
   0xd   :  { %27 = dma.hbm_to_vmem [thread:$0]  %s286_s0, 1024, %s22_s10, [#allocation4], %s249_s12, %s249_s12, %s250_s13  }
   0xe   :  { %s251_s16 = smov [#allocation6]  }
   0xf   :  { %s39_s17 = sshll.u32 %s251_s16, 4  ;;  %s40_s17 = int_to_ptr.vmem [resolvable:$true] %s39_s17 }
  0x10   :  { %s210_s18 = scalar_lea.vmem %s40_s17, 1024  ;;  %p215_p6 = scmp.lt.s32.totalorder %s40_s17, %s40_s17 }
  0x11   :  { %p211_p5 = scmp.ne.s32.totalorder %s40_s17, %s210_s18  ;;  %p216_p7 = scmp.lt.s32.totalorder %s210_s18, %s210_s18 }
  0x13   :  { %p217_p8 = por %p216_p7, %p215_p6 }
  0x15   :  { %p218_p9 = pnand %p217_p8, %p211_p5 }
  0x17   :  { %221 = shalt.err (!%p218_p9)
}
  0x18   :  { %45 = dma.hbm_to_vmem [thread:$0]  %s287_s1, 1024, %s40_s17, [#allocation7], %s249_s12, %s249_s12, %s250_s13  }
  0x19   :  { %242 = dma.done.wait [#allocation4], 1024  }
  0x1a   :  { %243 = vsyncadd [#allocation4], 4294966272 }
  0x1b   :  { %244 = dma.done.wait [#allocation7], 1024  }
  0x1c   :  { %245 = vsyncadd [#allocation7], 4294966272  ;;  %v72_v0 = vld [vmem:[#allocation3] sm:$0xff]  ;;  %v73_v2 = vld [vmem:[#allocation3 + $0x8] sm:$0xff]  ;;  %s252_s0 = smov [#allocation8]  }
  0x1d   :  { %v80_v1 = vld [vmem:[#allocation6] sm:$0xff]  ;;  %v81_v4 = vld [vmem:[#allocation6 + $0x8] sm:$0xff]  ;;  %v74_v5 = vld [vmem:[#allocation3 + $0x10] sm:$0xff]  ;;  %s160_s1 = sshll.u32 %s252_s0, 4  ;;  %s161_s1 = int_to_ptr.vmem [resolvable:$true] %s160_s1 }
  0x1e   :  { %v88_v3 = vsub.f32 %v72_v0, %v80_v1  ;;  %v82_v6 = vld [vmem:[#allocation6 + $0x10] sm:$0xff]  ;;  %v89_v7 = vsub.f32 %v73_v2, %v81_v4  ;;  %v75_v9 = vld [vmem:[#allocation3 + $0x18] sm:$0xff]  ;;  %v76_v11 = vld [vmem:[#allocation3 + $0x20] sm:$0xff]  ;;  %s222_s21 = scalar_lea.vmem %s161_s1, 1024  ;;  %p227_p11 = scmp.lt.s32.totalorder %s161_s1, %s161_s1 }
  0x1f   :  { %v90_v8 = vsub.f32 %v74_v5, %v82_v6  ;;  %v83_v10 = vld [vmem:[#allocation6 + $0x18] sm:$0xff]  ;;  %v84_v14 = vld [vmem:[#allocation6 + $0x20] sm:$0xff]  ;;  %v77_v15 = vld [vmem:[#allocation3 + $0x28] sm:$0xff]  ;;  %p223_p10 = scmp.ne.s32.totalorder %s161_s1, %s222_s21  ;;  %p228_p12 = scmp.lt.s32.totalorder %s222_s21, %s222_s21 }
  0x20   :  { %v96_v12 = vmul.f32 %v88_v3, %v88_v3  ;;  %v91_v13 = vsub.f32 %v75_v9, %v83_v10  ;;  %v85_v16 = vld [vmem:[#allocation6 + $0x28] sm:$0xff]  ;;  %v97_v17 = vmul.f32 %v89_v7, %v89_v7  ;;  %v92_v19 = vsub.f32 %v76_v11, %v84_v14  ;;  %v78_v21 = vld [vmem:[#allocation3 + $0x30] sm:$0xff]  ;;  %v79_v23 = vld [vmem:[#allocation3 + $0x38] sm:$0xff] }
  0x21   :  { %v98_v18 = vmul.f32 %v90_v8, %v90_v8  ;;  %v93_v20 = vsub.f32 %v77_v15, %v85_v16  ;;  %v86_v22 = vld [vmem:[#allocation6 + $0x30] sm:$0xff]  ;;  %v87_v26 = vld [vmem:[#allocation6 + $0x38] sm:$0xff]  ;;  %p229_p13 = por %p228_p12, %p227_p11 }
  0x22   :  { %147 = vst [vmem:[#allocation8] sm:$0xff] %v96_v12  ;;  %v99_v24 = vmul.f32 %v91_v13, %v91_v13  ;;  %v94_v25 = vsub.f32 %v78_v21, %v86_v22  ;;  %148 = vst [vmem:[#allocation8 + $0x8] sm:$0xff] %v97_v17  ;;  %v100_v27 = vmul.f32 %v92_v19, %v92_v19 }
  0x23   :  { %149 = vst [vmem:[#allocation8 + $0x10] sm:$0xff] %v98_v18  ;;  %v101_v28 = vmul.f32 %v93_v20, %v93_v20  ;;  %v95_v29 = vsub.f32 %v79_v23, %v87_v26  ;;  %p230_p0 = pnand %p229_p13, %p223_p10 }
  0x24   :  { %150 = vst [vmem:[#allocation8 + $0x18] sm:$0xff] %v99_v24  ;;  %v102_v30 = vmul.f32 %v94_v25, %v94_v25  ;;  %151 = vst [vmem:[#allocation8 + $0x20] sm:$0xff] %v100_v27 }
  0x25   :  { %152 = vst [vmem:[#allocation8 + $0x28] sm:$0xff] %v101_v28  ;;  %v103_v31 = vmul.f32 %v95_v29, %v95_v29 }
  0x26   :  { %153 = vst [vmem:[#allocation8 + $0x30] sm:$0xff] %v102_v30 }
  0x27   :  { %154 = vst [vmem:[#allocation8 + $0x38] sm:$0xff] %v103_v31 }
  0x28   :  { %233 = shalt.err (!%p230_p0)
}
  0x29   :  { %166 = dma.vmem_to_hbm [thread:$0]  %s161_s1, 1024, %s288_s2, [#allocation5], %s249_s12, %s249_s12, %s250_s13  }
  0x2a   :  { %246 = dma.done.wait [#allocation5], 1024  }
  0x2b   :  { %247 = vsyncadd [#allocation5], 4294966272 }
  0x2c   :  { %170 = vsyncpa [#allocation4], 1 }
  0x2d   :  { %171 = vsyncpa [#allocation7], 1 }
  0x2e   :  { %172 = vsyncpa [#allocation5], 1 }

</bundles_post_ra>
